<compile_context>
chip_gen: v5e
topology: v5e:2x2
jax: 0.10.0
libtpu: 0.0.40
codegen_flags: <defaults>
</compile_context>

<pallas_src>
import functools

import jax
import jax.numpy as jnp
from jax.experimental import pallas as pl
from jax.experimental.pallas import tpu as pltpu


def _linear_hardsigmoid_kernel(x_ref, w_ref, b_ref, o_ref):
    # x_ref: (tm, tk); w_ref: (tk, tn); b_ref: (1, tn) f32; o_ref: (tm, tn) f32
    k = pl.program_id(2)
    nk = pl.num_programs(2)

    prod = jnp.dot(x_ref[...], w_ref[...], preferred_element_type=jnp.float32)

    @pl.when(k == 0)
    def _():
        o_ref[...] = prod

    @pl.when(k > 0)
    def _():
        o_ref[...] += prod

    @pl.when(k == nk - 1)
    def _():
        # clamp(y + 3, 0, 6) / 6  ==  clip(y * (1/6) + 0.5, 0, 1)   (all f32, no divide)
        y = o_ref[...] + b_ref[...].astype(jnp.float32)
        o_ref[...] = jnp.clip(y * (1.0 / 6.0) + 0.5, 0.0, 1.0)


def _round_up(a, m):
    return ((a + m - 1) // m) * m


def _largest_aligned_divisor(n, align, cap):
    """Largest multiple of `align` that divides `n` and is <= cap (n % align == 0)."""
    best = align
    t = align
    while t <= min(cap, n):
        if n % t == 0:
            best = t
        t += align
    return best


def _choose_tiles(Mp, Kp, Np, itemsize):
    # N: avoid N padding entirely when OUT (padded to 128) fits in one tile; otherwise
    # pick a 128-multiple divisor of Np so no extra padding / masked stores appear.
    tn = Np if Np <= 512 else _largest_aligned_divisor(Np, 128, 512)
    # K: collapse the K loop when it fits the VMEM budget (single K step => no revisit).
    k_cap = 2048 if itemsize <= 2 else 1024
    tk = Kp if Kp <= k_cap else _largest_aligned_divisor(Kp, 128, k_cap)
    # M: padding on M is cheap (x rows + sliced output rows); cap at 256.
    tm = min(Mp, 256)
    # v7x has 2 TensorCores: keep >= 2 parallel (i, j) tiles when there is enough work.
    if (Mp // tm) * (Np // tn) == 1:
        if tm >= 16:
            tm = _round_up(tm // 2, 8)
        elif Np // 128 >= 2:
            tn = _largest_aligned_divisor(Np, 128, max(128, Np // 2))
    return tm, tk, tn


def pack_linear_params(w, b, *, compute_dtype=jnp.float32):
    """Prepack torch-layout Linear params: w (OUT, IN), b (OUT,).

    Does the transpose + 128-alignment pad ONCE (hoists a full extra HBM pass of the
    weight off the per-call path).  Returns (w_packed (Kp, Np), b_packed (1, Np) f32,
    out_features).
    """
    OUT, IN = w.shape
    Kp = _round_up(IN, 128)
    Np = _round_up(OUT, 128)
    wp = jnp.pad(jnp.transpose(w), ((0, Kp - IN), (0, Np - OUT))).astype(compute_dtype)
    bp = jnp.pad(b.reshape(1, OUT), ((0, 0), (0, Np - OUT))).astype(jnp.float32)
    return wp, bp, OUT


@functools.partial(jax.jit, static_argnames=("out_features",))
def linear_hardsigmoid_packed(x, w_packed, b_packed, *, out_features):
    """x: (B, IN) f32; w_packed/b_packed from pack_linear_params. Returns (B, OUT) f32."""
    B, IN = x.shape
    Kp, Np = w_packed.shape
    itemsize = jnp.dtype(w_packed.dtype).itemsize

    Mp = _round_up(B, 8)
    tm, tk, tn = _choose_tiles(Mp, Kp, Np, itemsize)
    Mp = _round_up(Mp, tm)

    # Pad + (optionally) cast x; fuses under jit with the pallas_call dispatch.
    xp = jnp.pad(x, ((0, Mp - B), (0, Kp - IN))).astype(w_packed.dtype)

    out_padded = pl.pallas_call(
        _linear_hardsigmoid_kernel,
        out_shape=jax.ShapeDtypeStruct((Mp, Np), jnp.float32),
        grid_spec=pltpu.PrefetchScalarGridSpec(
            num_scalar_prefetch=0,
            grid=(Mp // tm, Np // tn, Kp // tk),
            in_specs=[
                pl.BlockSpec((tm, tk), lambda i, j, k: (i, k)),
                pl.BlockSpec((tk, tn), lambda i, j, k: (k, j)),
                pl.BlockSpec((1, tn), lambda i, j, k: (0, j)),
            ],
            out_specs=pl.BlockSpec((tm, tn), lambda i, j, k: (i, j)),
        ),
        compiler_params=pltpu.CompilerParams(
            dimension_semantics=("parallel", "parallel", "arbitrary"),
            vmem_limit_bytes=32 * 1024 * 1024,  # tiles are a few MiB; safe on v5e/v6e/v7x
        ),
    )(xp, w_packed, b_packed)

    return out_padded[:B, :out_features]


def linear_hardsigmoid(x, w, b, *, compute_dtype=jnp.float32):
    """Convenience one-shot path (packs every call). Prefer pack_linear_params + packed."""
    wp, bp, out_features = pack_linear_params(w, b, compute_dtype=compute_dtype)
    return linear_hardsigmoid_packed(x, wp, bp, out_features=out_features)


def _reference(x, w, b):
    y = x @ w.T + b
    return jnp.clip(y + 3.0, 0.0, 6.0) / 6.0


if __name__ == "__main__":
    key = jax.random.PRNGKey(0)

    # --- Shapes from the PyTorch module: Linear(16, 4), x = randn(1, 16) ---
    B, IN, OUT = 1, 16, 4
    kx, kw, kb = jax.random.split(key, 3)
    bound = 1.0 / (IN ** 0.5)
    w = jax.random.uniform(kw, (OUT, IN), jnp.float32, -bound, bound)   # torch (OUT, IN)
    b = jax.random.uniform(kb, (OUT,), jnp.float32, -bound, bound)
    x = jax.random.normal(kx, (B, IN), jnp.float32)

    wp, bp, nout = pack_linear_params(w, b)            # prepack once (parameters)
    out = linear_hardsigmoid_packed(x, wp, bp, out_features=nout)
    jax.block_until_ready(out)
    ref = _reference(x, w, b)
    assert out.shape == (B, OUT)
    assert jnp.allclose(out, ref, atol=1e-5, rtol=1e-5)

    # --- Larger check exercising the tiled M/N/K grid + megacore split path ---
    B2, IN2, OUT2 = 128, 1024, 384
    k2x, k2w, k2b = jax.random.split(jax.random.PRNGKey(1), 3)
    bound2 = 1.0 / (IN2 ** 0.5)
    w2 = jax.random.uniform(k2w, (OUT2, IN2), jnp.float32, -bound2, bound2)
    b2 = jax.random.uniform(k2b, (OUT2,), jnp.float32, -bound2, bound2)
    x2 = jax.random.normal(k2x, (B2, IN2), jnp.float32)
    ref2 = _reference(x2, w2, b2)

    # f32 operand path (bit-accurate-ish vs reference)
    wp2, bp2, nout2 = pack_linear_params(w2, b2)
    out2 = linear_hardsigmoid_packed(x2, wp2, bp2, out_features=nout2)
    jax.block_until_ready(out2)
    assert out2.shape == (B2, OUT2)
    assert jnp.allclose(out2, ref2, atol=1e-4, rtol=1e-4)

    # bf16 operand path (half the weight HBM traffic, f32 MXU accumulation) — looser tol.
    wp2b, bp2b, _ = pack_linear_params(w2, b2, compute_dtype=jnp.bfloat16)
    out2b = linear_hardsigmoid_packed(x2, wp2b, bp2b, out_features=nout2)
    jax.block_until_ready(out2b)
    assert jnp.allclose(out2b, ref2, atol=1e-2, rtol=1e-2)

    print("KERNEL_OK")
</pallas_src>

<mosaic_0001>
module attributes {stable_mosaic.version = 11 : i64} {
  func.func @_linear_hardsigmoid_kernel(%arg0: i32, %arg1: i32, %arg2: i32, %arg3: memref<8x128xf32, #tpu.memory_space<vmem>>, %arg4: memref<128x128xf32, #tpu.memory_space<vmem>>, %arg5: memref<1x128xf32, #tpu.memory_space<vmem>>, %arg6: memref<8x128xf32, #tpu.memory_space<vmem>>) attributes {dimension_semantics = [#tpu.dimension_semantics<parallel>, #tpu.dimension_semantics<parallel>, #tpu.dimension_semantics<arbitrary>], iteration_bounds = array<i64: 1, 1, 1>, scalar_prefetch = 0 : i64, scratch_operands = 0 : i64, tpu.core_type = #tpu.core_type<tc>, window_params = [{transform_indices = @transform_0, window_bounds = array<i64: 8, 128>}, {transform_indices = @transform_1, window_bounds = array<i64: 128, 128>}, {transform_indices = @transform_2, window_bounds = array<i64: 1, 128>}, {transform_indices = @transform_3, window_bounds = array<i64: 8, 128>}]} {
    %c0 = arith.constant 0 : index
    %c0_0 = arith.constant 0 : index
    %0 = vector.load %arg3[%c0, %c0_0] : memref<8x128xf32, #tpu.memory_space<vmem>>, vector<8x128xf32>
    %c0_1 = arith.constant 0 : index
    %c0_2 = arith.constant 0 : index
    %1 = vector.load %arg4[%c0_1, %c0_2] : memref<128x128xf32, #tpu.memory_space<vmem>>, vector<128x128xf32>
    %cst = arith.constant dense<0.000000e+00> : vector<8x128xf32>
    %2 = tpu.matmul %0, %1, %cst {dimension_numbers = #tpu.dot_dimension_numbers<[1], [0], [0], [1], [0, 0, 1, 1], [], []>} : vector<8x128xf32>, vector<128x128xf32>, vector<8x128xf32> -> vector<8x128xf32>
    %c0_i32 = arith.constant 0 : i32
    %3 = arith.cmpi eq, %arg2, %c0_i32 : i32
    %4 = arith.extui %3 : i1 to i32
    %c0_i32_3 = arith.constant 0 : i32
    %5 = arith.cmpi ne, %4, %c0_i32_3 : i32
    scf.if %5 {
      %c0_8 = arith.constant 0 : index
      %c0_9 = arith.constant 0 : index
      %12 = vector.load %arg6[%c0_8, %c0_9] : memref<8x128xf32, #tpu.memory_space<vmem>>, vector<8x128xf32>
      tpu.vector_store %arg6[%c0_8, %c0_9], %2 {strides = array<i32>} : memref<8x128xf32, #tpu.memory_space<vmem>>, vector<8x128xf32>,
    } else {
    }
    %c0_i32_4 = arith.constant 0 : i32
    %6 = arith.cmpi sgt, %arg2, %c0_i32_4 : i32
    %7 = arith.extui %6 : i1 to i32
    %c0_i32_5 = arith.constant 0 : i32
    %8 = arith.cmpi ne, %7, %c0_i32_5 : i32
    scf.if %8 {
      %c0_8 = arith.constant 0 : index
      %c0_9 = arith.constant 0 : index
      %12 = vector.load %arg6[%c0_8, %c0_9] : memref<8x128xf32, #tpu.memory_space<vmem>>, vector<8x128xf32>
      %13 = arith.addf %12, %2 : vector<8x128xf32>
      %c0_10 = arith.constant 0 : index
      %c0_11 = arith.constant 0 : index
      %14 = vector.load %arg6[%c0_10, %c0_11] : memref<8x128xf32, #tpu.memory_space<vmem>>, vector<8x128xf32>
      tpu.vector_store %arg6[%c0_10, %c0_11], %13 {strides = array<i32>} : memref<8x128xf32, #tpu.memory_space<vmem>>, vector<8x128xf32>,
    } else {
    }
    %c0_i32_6 = arith.constant 0 : i32
    %9 = arith.cmpi eq, %arg2, %c0_i32_6 : i32
    %10 = arith.extui %9 : i1 to i32
    %c0_i32_7 = arith.constant 0 : i32
    %11 = arith.cmpi ne, %10, %c0_i32_7 : i32
    scf.if %11 {
      %c0_8 = arith.constant 0 : index
      %c0_9 = arith.constant 0 : index
      %12 = vector.load %arg6[%c0_8, %c0_9] : memref<8x128xf32, #tpu.memory_space<vmem>>, vector<8x128xf32>
      %c0_10 = arith.constant 0 : index
      %c0_11 = arith.constant 0 : index
      %13 = vector.load %arg5[%c0_10, %c0_11] : memref<1x128xf32, #tpu.memory_space<vmem>>, vector<1x128xf32>
      %14 = vector.broadcast %13 : vector<1x128xf32> to vector<8x128xf32>
      %15 = arith.addf %12, %14 : vector<8x128xf32>
      %cst_12 = arith.constant 0.166666672 : f32
      %16 = vector.broadcast %cst_12 : f32 to vector<8x128xf32>
      %17 = arith.mulf %15, %16 : vector<8x128xf32>
      %cst_13 = arith.constant 5.000000e-01 : f32
      %18 = vector.broadcast %cst_13 : f32 to vector<8x128xf32>
      %19 = arith.addf %17, %18 : vector<8x128xf32>
      %cst_14 = arith.constant 0.000000e+00 : f32
      %cst_15 = arith.constant 1.000000e+00 : f32
      %20 = vector.broadcast %cst_14 : f32 to vector<8x128xf32>
      %21 = arith.maximumf %20, %19 : vector<8x128xf32>
      %22 = vector.broadcast %cst_15 : f32 to vector<8x128xf32>
      %23 = arith.minimumf %22, %21 : vector<8x128xf32>
      %c0_16 = arith.constant 0 : index
      %c0_17 = arith.constant 0 : index
      %24 = vector.load %arg6[%c0_16, %c0_17] : memref<8x128xf32, #tpu.memory_space<vmem>>, vector<8x128xf32>
      tpu.vector_store %arg6[%c0_16, %c0_17], %23 {strides = array<i32>} : memref<8x128xf32, #tpu.memory_space<vmem>>, vector<8x128xf32>,
    } else {
    }
    return
  }
  func.func @transform_0(%arg0: i32, %arg1: i32, %arg2: i32) -> (i32, i32) {
    %c0_i32 = arith.constant 0 : i32
    return %arg0, %arg2 : i32, i32
  }
  func.func @transform_1(%arg0: i32, %arg1: i32, %arg2: i32) -> (i32, i32) {
    %c0_i32 = arith.constant 0 : i32
    return %arg2, %arg1 : i32, i32
  }
  func.func @transform_2(%arg0: i32, %arg1: i32, %arg2: i32) -> (i32, i32) {
    %c0_i32 = arith.constant 0 : i32
    %c0_i32_0 = arith.constant 0 : i32
    return %c0_i32, %arg1 : i32, i32
  }
  func.func @transform_3(%arg0: i32, %arg1: i32, %arg2: i32) -> (i32, i32) {
    %c0_i32 = arith.constant 0 : i32
    return %arg0, %arg1 : i32, i32
  }
}

</mosaic_0001>

<bundles_post_ra>
// kernel: linear_hardsigmoid_packed.1
= control target key start
LH: loop header
LB: loop body
LE: loop exit
PB: predicated region body
PF: predicated region fallthrough
CT: control target
= control target key end

     0   :  { %8 = vsyncpa [#allocation3], 0  ;;  %s128_s15 = smov [#allocation2]   ;;  %s129_s17 = smov 128   ;;  %s163_s0 = inlined_call_operand.vmem [shape: f32[8,128], index: 0, kind: input, shape index: {}]   ;;  %s164_s1 = inlined_call_operand.hbm [shape: f32[128,128], index: 1, kind: input, shape index: {}]   ;;  %s165_s2 = inlined_call_operand.vmem [shape: f32[1,128], index: 2, kind: input, shape index: {}]   ;;  %s166_s3 = inlined_call_operand.vmem [shape: f32[8,128], index: 3, kind: output, shape index: {}]  }
   0x1   :  { %s15_s14 = sshll.u32 %s164_s1, 4  ;;  %s17_s16 = sshll.u32 %s128_s15, 4  ;;  %s16_s14 = int_to_ptr.hbm [resolvable:$true] %s15_s14  ;;  %s18_s16 = int_to_ptr.vmem [resolvable:$true] %s17_s16 }
   0x2   :  { %s130_s18 = smov 8  }
   0x3   :  { %23 = dma.hbm_to_vmem [thread:$0]  %s16_s14, 2048, %s18_s16, [#allocation3], %s129_s17, %s129_s17, %s130_s18  }
   0x4   :  { %126 = dma.done.wait [#allocation3], 2048  }
   0x5   :  { %127 = vsyncadd [#allocation3], 4294965248  ;;  %v46_v0 = vld [vmem:[#allocation2 + $0x78] sm:$0xff]  ;;  %v45_v1 = vld [vmem:[#allocation2 + $0x70] sm:$0xff] }
   0x6   :  { %47 = vmatpush.msra.mxu0 %v46_v0  ;;  %v44_v2 = vld [vmem:[#allocation2 + $0x68] sm:$0xff]  ;;  %v43_v3 = vld [vmem:[#allocation2 + $0x60] sm:$0xff]  ;;  %v42_v4 = vld [vmem:[#allocation2 + $0x58] sm:$0xff] }
   0x7   :  { %v41_v5 = vld [vmem:[#allocation2 + $0x50] sm:$0xff]  ;;  %v40_v6 = vld [vmem:[#allocation2 + $0x48] sm:$0xff]  ;;  %v39_v7 = vld [vmem:[#allocation2 + $0x40] sm:$0xff] }
   0x8   :  { %48 = vmatpush.msra.mxu0 %v45_v1  ;;  %v38_v8 = vld [vmem:[#allocation2 + $0x38] sm:$0xff]  ;;  %v37_v9 = vld [vmem:[#allocation2 + $0x30] sm:$0xff]  ;;  %v36_v10 = vld [vmem:[#allocation2 + $0x28] sm:$0xff] }
   0x9   :  { %v35_v11 = vld [vmem:[#allocation2 + $0x20] sm:$0xff]  ;;  %v34_v12 = vld [vmem:[#allocation2 + $0x18] sm:$0xff]  ;;  %v33_v13 = vld [vmem:[#allocation2 + $0x10] sm:$0xff] }
   0xa   :  { %49 = vmatpush.msra.mxu0 %v44_v2  ;;  %v32_v14 = vld [vmem:[#allocation2 + $0x8] sm:$0xff]  ;;  %v31_v15 = vld [vmem:[#allocation2] sm:$0xff] }
   0xb   :  { %v30_v16 = vld [vmem:[%s163_s0] sm:$0xff] }
   0xc   :  { %50 = vmatpush.msra.mxu0 %v43_v3  ;;  %v101_v17 = vld [vmem:[%s165_s2] ss:$0 sm:$0xff] }
   0xe   :  { %51 = vmatpush.msra.mxu0 %v42_v4 }
  0x10   :  { %52 = vmatpush.msra.mxu0 %v41_v5 }
  0x12   :  { %53 = vmatpush.msra.mxu0 %v40_v6 }
  0x14   :  { %54 = vmatpush.msra.mxu0 %v39_v7 }
  0x16   :  { %55 = vmatpush.msra.mxu0 %v38_v8 }
  0x18   :  { %56 = vmatpush.msra.mxu0 %v37_v9 }
  0x1a   :  { %57 = vmatpush.msra.mxu0 %v36_v10 }
  0x1c   :  { %58 = vmatpush.msra.mxu0 %v35_v11 }
  0x1e   :  { %59 = vmatpush.msra.mxu0 %v34_v12 }
  0x20   :  { %60 = vmatpush.msra.mxu0 %v33_v13 }
  0x22   :  { %61 = vmatpush.msra.mxu0 %v32_v14 }
  0x24   :  { %62 = vmatpush.msra.mxu0 %v31_v15 }
  0x25   :  { %63 = vmatmul.f32.vlgmr.msra.gmra.mxu0 %v30_v16 }
  0xa2   :  { %v64_v18 = vpop.f32.mrf.mxu0 }
  0xa3   :  { %v87_v19 = vadd.f32 %v101_v17, %v64_v18 }
  0xa5   :  { %v88_v20 = vmul.f32 0.16666667, %v87_v19 }
  0xa7   :  { %v89_v21 = vadd.f32 0.5, %v88_v20 }
  0xa9   :  { %v90_v22 = vmax.f32 %v89_v21, 0.0 }
  0xab   :  { %v91_v23 = vmin.f32 %v90_v22, 1.0 }
  0xad   :  { %92 = vst [vmem:[%s166_s3] sm:$0xff] %v91_v23 }
  0xae   :  { %97 = vsyncpa [#allocation3], 1 }

</bundles_post_ra>
